<compile_context>
chip_gen: v7x
topology: tpu7x:2x2x1
jax: 0.10.0
libtpu: 0.0.40
codegen_flags: <defaults>
</compile_context>

<pallas_src>
import jax
import jax.numpy as jnp
from jax.experimental import pallas as pl
from jax.experimental.pallas import tpu as pltpu

LANES = 128


def _round_up(x, m):
    return ((x + m - 1) // m) * m


def _make_bce_dice_kernel(block_rows, valid_last, needs_mask):
    """Kernel producing per-block lane-wise partial sums [bce, p*t, p, t] -> (4, 128)."""

    def emit(x, t, out_ref):
        # Shared exp(-|x|) for the stable BCE term and the sigmoid (one exp instead of two).
        e = jnp.exp(-jnp.abs(x))
        bce = jnp.maximum(x, 0.0) - x * t + jnp.log1p(e)
        # Exact reciprocal: cheaper than the generic divide, preserves the 1e-5 tolerance.
        r = pl.reciprocal(1.0 + e, approx=False)
        p = jnp.where(x >= 0.0, r, e * r)            # numerically stable sigmoid(x)
        # Sublane-only reductions (VPU); cross-lane reduction deferred to the wrapper.
        # Direct row stores -> no concatenate / sublane relayout.
        out_ref[0:1, :] = jnp.sum(bce, axis=0, keepdims=True)
        out_ref[1:2, :] = jnp.sum(p * t, axis=0, keepdims=True)
        out_ref[2:3, :] = jnp.sum(p, axis=0, keepdims=True)
        out_ref[3:4, :] = jnp.sum(t, axis=0, keepdims=True)

    def kernel(x_ref, t_ref, out_ref):
        if needs_mask:  # static Python flag: only the ragged-last-block configuration traces this
            is_last = pl.program_id(0) == pl.num_programs(0) - 1

            @pl.when(jnp.logical_not(is_last))
            def _():
                # Unmasked fast path: every full block pays zero masking cost.
                emit(x_ref[...].astype(jnp.float32), t_ref[...].astype(jnp.float32), out_ref)

            @pl.when(is_last)
            def _():
                x = x_ref[...].astype(jnp.float32)
                t = t_ref[...].astype(jnp.float32)
                # (br,1) iota, broadcast in the selects; valid_last is a compile-time constant.
                keep = jax.lax.broadcasted_iota(jnp.int32, (block_rows, 1), 0) < valid_last
                # Neutral logit -100: bce term ~0, sigmoid ~0; neutral target: 0.
                emit(jnp.where(keep, x, -100.0), jnp.where(keep, t, 0.0), out_ref)
        else:
            emit(x_ref[...].astype(jnp.float32), t_ref[...].astype(jnp.float32), out_ref)

    return kernel


def bce_dice_loss(logits, target, *, block_rows=None):
    assert logits.shape == target.shape
    n = logits.size

    xf = logits.reshape(-1)   # native dtype; reshape of a contiguous array is free
    tf = target.reshape(-1)   # keep targets narrow (bool/int8/bf16) at the caller for less HBM traffic

    rows_raw = pl.cdiv(n, LANES)
    bytes_per_row = LANES * (xf.dtype.itemsize + tf.dtype.itemsize)

    if block_rows is None:
        # ~8 MiB of input per grid step: 8192 rows for f32+f32, 16384 for bf16+bf16.
        block_rows = (8 << 20) // bytes_per_row
    # Hard cap so 2 (double-buffer) x per-step input bytes + headroom stays under ~48 MiB (v7x-safe).
    block_rows = max(8, min(int(block_rows), (20 << 20) // bytes_per_row))
    block_rows = _round_up(block_rows, 8)

    if rows_raw > block_rows:
        br = block_rows
    elif rows_raw >= 4096:
        # Fits one tile, but keep grid >= 2 so a megacore split / DMA-compute overlap is possible.
        br = _round_up(pl.cdiv(rows_raw, 2), 8)
    else:
        br = int(rows_raw)    # full-dim block for small inputs (exempt from the (8,128) rule)

    block_elems = br * LANES

    if n % LANES != 0:
        # Rare path: must pad so the flat array reshapes to (rows, 128).  Pad all the way to a
        # whole number of blocks with neutral values (logit=-100 -> ~0 contribution, target=0)
        # so no in-kernel mask is needed.
        padded = pl.cdiv(n, block_elems) * block_elems
        xf = jnp.pad(xf, (0, padded - n), constant_values=-100.0)
        tf = jnp.pad(tf, (0, padded - n), constant_values=0)
        rows = padded // LANES
        needs_mask = False
    else:
        # Common path: zero copies.  A ragged last block (rows % br != 0) is masked in-kernel,
        # gated to the last grid step only.
        rows = n // LANES
        needs_mask = (rows % br) != 0

    x2 = xf.reshape(rows, LANES)
    t2 = tf.reshape(rows, LANES)
    grid = pl.cdiv(rows, br)
    valid_last = rows - (grid - 1) * br   # rows valid in the last block (compile-time constant)

    # VMEM budget: 2 double-buffered input tiles + headroom; never below the 32 MiB default of
    # v6e/v7x (so we only ever *raise* the effective limit, e.g. past v5e's 16 MiB default),
    # never above 48 MiB (keeps headroom inside v7x's 64 MiB per-TC VMEM).
    step_in_bytes = br * LANES * (x2.dtype.itemsize + t2.dtype.itemsize)
    vmem_limit = int(min(max(2 * step_in_bytes + (8 << 20), 32 << 20), 48 << 20))

    total = rows * LANES
    cost = pl.CostEstimate(
        flops=16 * total,
        transcendentals=3 * total,
        bytes_accessed=total * (x2.dtype.itemsize + t2.dtype.itemsize) + grid * 4 * LANES * 4,
    )

    parts = pl.pallas_call(
        _make_bce_dice_kernel(br, valid_last, needs_mask),
        out_shape=jax.ShapeDtypeStruct((grid, 4, LANES), jnp.float32),
        grid=(grid,),
        in_specs=[
            pl.BlockSpec((br, LANES), lambda i: (i, 0)),
            pl.BlockSpec((br, LANES), lambda i: (i, 0)),
        ],
        # Each grid step owns its own (4,128) partial block -> axis is "parallel"
        # (no accumulator races anywhere).
        out_specs=pl.BlockSpec((None, 4, LANES), lambda i: (i, 0, 0)),
        compiler_params=pltpu.CompilerParams(
            dimension_semantics=("parallel",),
            vmem_limit_bytes=vmem_limit,
        ),
        cost_estimate=cost,
    )(x2, t2)

    # Final (tiny) cross-lane + cross-block reduction in plain XLA.
    sums = jnp.sum(parts, axis=(0, 2))                  # (4,)
    bce_sum, inter, p_sum, t_sum = sums[0], sums[1], sums[2], sums[3]

    bce = bce_sum / jnp.float32(n)
    card = p_sum + t_sum
    dice_score = (2.0 * inter) / jnp.maximum(card, jnp.float32(1e-7))
    dice_loss = (1.0 - dice_score) * (t_sum > 0).astype(jnp.float32)
    return bce + dice_loss


def _reference_loss(x, t):
    x = x.astype(jnp.float32)
    t = t.astype(jnp.float32)
    bce = jnp.mean(jnp.maximum(x, 0.0) - x * t + jnp.log1p(jnp.exp(-jnp.abs(x))))
    p = jax.nn.sigmoid(x)
    inter = jnp.sum(p * t)
    card = jnp.sum(p + t)
    dice = 2.0 * inter / jnp.maximum(card, 1e-7)
    dice_loss = (1.0 - dice) * (jnp.sum(t) > 0).astype(jnp.float32)
    return bce + dice_loss


if __name__ == "__main__":
    key = jax.random.PRNGKey(0)
    k1, k2, k3, k4, k5, k6, k7, k8 = jax.random.split(key, 8)

    # Test 1: NCHW binary segmentation, aligned fast path (no pad, no mask, grid=1).
    logits = jax.random.normal(k1, (2, 1, 16, 16), dtype=jnp.float32)
    target = (jax.random.uniform(k2, (2, 1, 16, 16)) > 0.5).astype(jnp.float32)
    loss = jax.block_until_ready(bce_dice_loss(logits, target))
    ref = jax.block_until_ready(_reference_loss(logits, target))
    assert jnp.allclose(loss, ref, atol=1e-5), (loss, ref)

    # Test 2: ragged last block -> exercises the pl.when-gated in-kernel row mask
    # (small block_rows to keep it tiny; grid=2, mask only on the last step).
    logits2 = jax.random.normal(k3, (2, 1, 32, 48), dtype=jnp.float32)   # 3072 elems -> 24 rows
    target2 = (jax.random.uniform(k4, (2, 1, 32, 48)) > 0.5).astype(jnp.float32)
    loss2 = jax.block_until_ready(bce_dice_loss(logits2, target2, block_rows=16))
    ref2 = jax.block_until_ready(_reference_loss(logits2, target2))
    assert jnp.allclose(loss2, ref2, atol=1e-5), (loss2, ref2)

    # Test 3: size not a multiple of 128 + narrow native dtype -> neutral tail-pad path.
    logits3 = jax.random.normal(k5, (2, 1, 16, 15), dtype=jnp.bfloat16)  # 480 elems
    target3 = (jax.random.uniform(k6, (2, 1, 16, 15)) > 0.5).astype(jnp.float32)
    loss3 = jax.block_until_ready(bce_dice_loss(logits3, target3))
    ref3 = jax.block_until_ready(_reference_loss(logits3, target3))
    assert jnp.allclose(loss3, ref3, atol=1e-5), (loss3, ref3)

    # Test 4: moderate aligned input that triggers the auto grid>=2 split (4096 rows -> 2 blocks).
    logits4 = jax.random.normal(k7, (2, 1, 512, 512), dtype=jnp.float32)
    target4 = (jax.random.uniform(k8, (2, 1, 512, 512)) > 0.5).astype(jnp.float32)
    loss4 = jax.block_until_ready(bce_dice_loss(logits4, target4))
    ref4 = jax.block_until_ready(_reference_loss(logits4, target4))
    assert jnp.allclose(loss4, ref4, atol=1e-5), (loss4, ref4)

    print("KERNEL_OK")
</pallas_src>

<mosaic_0001>
module attributes {stable_mosaic.version = 11 : i64} {
  func.func @kernel(%arg0: i32, %arg1: memref<4x128xf32, #tpu.memory_space<vmem>>, %arg2: memref<4x128xf32, #tpu.memory_space<vmem>>, %arg3: memref<1x4x128xf32, #tpu.memory_space<vmem>>) attributes {dimension_semantics = [#tpu.dimension_semantics<parallel>], iteration_bounds = array<i64: 1>, scalar_prefetch = 0 : i64, scratch_operands = 0 : i64, tpu.core_type = #tpu.core_type<tc>, window_params = [{transform_indices = @transform_0, window_bounds = array<i64: 4, 128>}, {transform_indices = @transform_1, window_bounds = array<i64: 4, 128>}, {transform_indices = @transform_2, window_bounds = array<i64: 1, 4, 128>}]} {
    %c0 = arith.constant 0 : index
    %c0_0 = arith.constant 0 : index
    %0 = vector.load %arg1[%c0, %c0_0] : memref<4x128xf32, #tpu.memory_space<vmem>>, vector<4x128xf32>
    %c0_1 = arith.constant 0 : index
    %c0_2 = arith.constant 0 : index
    %1 = vector.load %arg2[%c0_1, %c0_2] : memref<4x128xf32, #tpu.memory_space<vmem>>, vector<4x128xf32>
    %2 = math.absf %0 : vector<4x128xf32>
    %cst = arith.constant 0.000000e+00 : f32
    %3 = vector.broadcast %cst : f32 to vector<4x128xf32>
    %4 = arith.subf %3, %2 : vector<4x128xf32>
    %5 = math.exp %4 : vector<4x128xf32>
    %cst_3 = arith.constant 0.000000e+00 : f32
    %6 = vector.broadcast %cst_3 : f32 to vector<4x128xf32>
    %7 = arith.maximumf %0, %6 : vector<4x128xf32>
    %8 = arith.mulf %0, %1 : vector<4x128xf32>
    %9 = arith.subf %7, %8 : vector<4x128xf32>
    %10 = math.log1p %5 : vector<4x128xf32>
    %11 = arith.addf %9, %10 : vector<4x128xf32>
    %cst_4 = arith.constant 1.000000e+00 : f32
    %12 = vector.broadcast %cst_4 : f32 to vector<4x128xf32>
    %13 = arith.addf %12, %5 : vector<4x128xf32>
    %14 = tpu.reciprocal %13 : vector<4x128xf32> -> vector<4x128xf32>
    %cst_5 = arith.constant 0.000000e+00 : f32
    %15 = vector.broadcast %cst_5 : f32 to vector<4x128xf32>
    %16 = arith.cmpf oge, %0, %15 : vector<4x128xf32>
    %17 = arith.mulf %5, %14 : vector<4x128xf32>
    %18 = arith.select %16, %14, %17 : vector<4x128xi1>, vector<4x128xf32>
    %cst_6 = arith.constant dense<0.000000e+00> : vector<128xf32>
    %19 = vector.multi_reduction <add>, %11, %cst_6 [0] : vector<4x128xf32> to vector<128xf32>
    %20 = vector.shape_cast %19 : vector<128xf32> to vector<1x128xf32>
    %c0_7 = arith.constant 0 : index
    %c0_8 = arith.constant 0 : index
    %c0_9 = arith.constant 0 : index
    %21 = vector.load %arg3[%c0_7, %c0_8, %c0_9] : memref<1x4x128xf32, #tpu.memory_space<vmem>>, vector<1x1x128xf32>
    %22 = vector.shape_cast %21 : vector<1x1x128xf32> to vector<1x128xf32>
    %23 = vector.shape_cast %20 : vector<1x128xf32> to vector<1x1x128xf32>
    tpu.vector_store %arg3[%c0_7, %c0_8, %c0_9], %23 {strides = array<i32>} : memref<1x4x128xf32, #tpu.memory_space<vmem>>, vector<1x1x128xf32>,
    %24 = arith.mulf %18, %1 : vector<4x128xf32>
    %cst_10 = arith.constant dense<0.000000e+00> : vector<128xf32>
    %25 = vector.multi_reduction <add>, %24, %cst_10 [0] : vector<4x128xf32> to vector<128xf32>
    %26 = vector.shape_cast %25 : vector<128xf32> to vector<1x128xf32>
    %c0_11 = arith.constant 0 : index
    %c1 = arith.constant 1 : index
    %c0_12 = arith.constant 0 : index
    %27 = vector.load %arg3[%c0_11, %c1, %c0_12] : memref<1x4x128xf32, #tpu.memory_space<vmem>>, vector<1x1x128xf32>
    %28 = vector.shape_cast %27 : vector<1x1x128xf32> to vector<1x128xf32>
    %29 = vector.shape_cast %26 : vector<1x128xf32> to vector<1x1x128xf32>
    tpu.vector_store %arg3[%c0_11, %c1, %c0_12], %29 {strides = array<i32>} : memref<1x4x128xf32, #tpu.memory_space<vmem>>, vector<1x1x128xf32>,
    %cst_13 = arith.constant dense<0.000000e+00> : vector<128xf32>
    %30 = vector.multi_reduction <add>, %18, %cst_13 [0] : vector<4x128xf32> to vector<128xf32>
    %31 = vector.shape_cast %30 : vector<128xf32> to vector<1x128xf32>
    %c0_14 = arith.constant 0 : index
    %c2 = arith.constant 2 : index
    %c0_15 = arith.constant 0 : index
    %32 = vector.load %arg3[%c0_14, %c2, %c0_15] : memref<1x4x128xf32, #tpu.memory_space<vmem>>, vector<1x1x128xf32>
    %33 = vector.shape_cast %32 : vector<1x1x128xf32> to vector<1x128xf32>
    %34 = vector.shape_cast %31 : vector<1x128xf32> to vector<1x1x128xf32>
    tpu.vector_store %arg3[%c0_14, %c2, %c0_15], %34 {strides = array<i32>} : memref<1x4x128xf32, #tpu.memory_space<vmem>>, vector<1x1x128xf32>,
    %cst_16 = arith.constant dense<0.000000e+00> : vector<128xf32>
    %35 = vector.multi_reduction <add>, %1, %cst_16 [0] : vector<4x128xf32> to vector<128xf32>
    %36 = vector.shape_cast %35 : vector<128xf32> to vector<1x128xf32>
    %c0_17 = arith.constant 0 : index
    %c3 = arith.constant 3 : index
    %c0_18 = arith.constant 0 : index
    %37 = vector.load %arg3[%c0_17, %c3, %c0_18] : memref<1x4x128xf32, #tpu.memory_space<vmem>>, vector<1x1x128xf32>
    %38 = vector.shape_cast %37 : vector<1x1x128xf32> to vector<1x128xf32>
    %39 = vector.shape_cast %36 : vector<1x128xf32> to vector<1x1x128xf32>
    tpu.vector_store %arg3[%c0_17, %c3, %c0_18], %39 {strides = array<i32>} : memref<1x4x128xf32, #tpu.memory_space<vmem>>, vector<1x1x128xf32>,
    return
  }
  func.func @transform_0(%arg0: i32) -> (i32, i32) {
    %c0_i32 = arith.constant 0 : i32
    %c0_i32_0 = arith.constant 0 : i32
    return %arg0, %c0_i32 : i32, i32
  }
  func.func @transform_1(%arg0: i32) -> (i32, i32) {
    %c0_i32 = arith.constant 0 : i32
    %c0_i32_0 = arith.constant 0 : i32
    return %arg0, %c0_i32 : i32, i32
  }
  func.func @transform_2(%arg0: i32) -> (i32, i32, i32) {
    %c0_i32 = arith.constant 0 : i32
    %c0_i32_0 = arith.constant 0 : i32
    %c0_i32_1 = arith.constant 0 : i32
    return %arg0, %c0_i32, %c0_i32_0 : i32, i32, i32
  }
}

</mosaic_0001>

<bundles_post_ra>
// kernel: tpu_custom_call.1
= control target key start
LH: loop header
LB: loop body
LE: loop exit
PB: predicated region body
PF: predicated region fallthrough
CT: control target
= control target key end

     0   :  { %7 = vsyncpa [#allocation3], 0  ;;  %s249_s0 = inlined_call_operand.hbm [shape: f32[4,128], index: 0, kind: input, shape index: {}]   ;;  %s250_s1 = inlined_call_operand.hbm [shape: f32[4,128], index: 1, kind: input, shape index: {}]   ;;  %s251_s2 = inlined_call_operand.hbm [shape: f32[1,4,128], index: 2, kind: output, shape index: {}]  }
   0x1   :  { %8 = vsyncpa [#allocation6], 0 }
   0x2   :  { %9 = vsyncpa [#allocation4], 0  ;;  %s191_s9 = smov [#allocation2]   ;;  %s192_s11 = smov [#allocation5]  }
   0x3   :  { %s16_s10 = sshll.u32 %s191_s9, 4  ;;  %s26_s12 = sshll.u32 %s192_s11, 4  ;;  %s17_s10 = int_to_ptr.vmem [resolvable:$true] %s16_s10  ;;  %s27_s12 = int_to_ptr.vmem [resolvable:$true] %s26_s12 }
   0x4   :  { %s119_s15 = scalar_lea.hbm %s249_s0, 64 }
   0x5   :  { %p120_p0 = scmp.ne.s32.totalorder %s249_s0, %s119_s15  ;;  %p123_p1 = scmp.lt.u32.totalorder %s119_s15, %s249_s0 }
   0x7   :  { %p125_p2 = pnand %p123_p1, %p120_p0 }
   0x9   :  { %128 = shalt.err (!%p125_p2)
}
   0xa   :  { %s129_s20 = scalar_lea.vmem %s17_s10, 64  ;;  %p134_p4 = scmp.lt.s32.totalorder %s17_s10, %s17_s10 }
   0xb   :  { %p130_p3 = scmp.ne.s32.totalorder %s17_s10, %s129_s20  ;;  %p135_p5 = scmp.lt.s32.totalorder %s129_s20, %s129_s20 }
   0xd   :  { %p136_p6 = por %p135_p5, %p134_p4 }
   0xf   :  { %p137_p7 = pnand %p136_p6, %p130_p3 }
  0x11   :  { %140 = shalt.err (!%p137_p7)
}
  0x12   :  { %19 = dma.hbm_to_vmem [thread:$0]  %s249_s0, 64, %s17_s10, [#allocation3]  }
  0x13   :  { %s141_s25 = scalar_lea.hbm %s250_s1, 64 }
  0x14   :  { %p142_p8 = scmp.ne.s32.totalorder %s250_s1, %s141_s25  ;;  %p145_p9 = scmp.lt.u32.totalorder %s141_s25, %s250_s1 }
  0x16   :  { %p147_p10 = pnand %p145_p9, %p142_p8 }
  0x18   :  { %150 = shalt.err (!%p147_p10)
}
  0x19   :  { %s151_s30 = scalar_lea.vmem %s27_s12, 64  ;;  %p156_p12 = scmp.lt.s32.totalorder %s27_s12, %s27_s12 }
  0x1a   :  { %p152_p11 = scmp.ne.s32.totalorder %s27_s12, %s151_s30  ;;  %p157_p13 = scmp.lt.s32.totalorder %s151_s30, %s151_s30 }
  0x1c   :  { %p158_p0 = por %p157_p13, %p156_p12 }
  0x1e   :  { %p159_p1 = pnand %p158_p0, %p152_p11 }
  0x20   :  { %162 = shalt.err (!%p159_p1)
}
  0x21   :  { %29 = dma.hbm_to_vmem [thread:$0]  %s250_s1, 64, %s27_s12, [#allocation6]  }
  0x22   :  { %185 = dma.done.wait [#allocation3], 64  }
  0x23   :  { %186 = vsyncadd [#allocation3], 4294967232 }
  0x24   :  { %187 = dma.done.wait [#allocation6], 64  }
  0x25   :  { %188 = vsyncadd [#allocation6], 4294967232  ;;  %vm60_vm0 = vcmask 1043456   ;;  %v36_v0 = vld [vmem:[#allocation2] sm:$0xf]  ;;  %s193_s1 = smov [#allocation7]  }
  0x26   :  { %v37_v1 = vld [vmem:[#allocation5] sm:$0xf]  ;;  %v38_v2 = vand.u32 2147483647, %v36_v0  ;;  %v42_v16 = vmax.f32 %v36_v0, 0.0  ;;  %vm57_vm2 = vcmp.ge.f32.partialorder %v36_v0, 0.0 }
  0x27   :  { %v86_v3 = vsel %vm60_vm0, %v37_v1, 0.0  ;;  %v43_v17 = vmul.f32 %v37_v1, %v36_v0  ;;  %s100_s4 = sshll.u32 %s193_s1, 4  ;;  %s101_s4 = int_to_ptr.vmem [resolvable:$true] %s100_s4 }
  0x28   :  { %v39_v4 = vsub.f32 0.0, %v38_v2  ;;  %v87_v5 = vrot.slane %v86_v3, 4  ;;  %s163_s5 = scalar_lea.vmem %s101_s4, 64  ;;  %p168_p3 = scmp.lt.s32.totalorder %s101_s4, %s101_s4 }
  0x29   :  { %v44_v21 = vsub.f32 %v42_v16, %v43_v17  ;;  %p164_p2 = scmp.ne.s32.totalorder %s101_s4, %s163_s5  ;;  %p169_p4 = scmp.lt.s32.totalorder %s163_s5, %s163_s5 }
  0x2a   :  { %v40_v6 = vmul.f32 1.442695, %v39_v4  ;;  %v88_v7 = vadd.f32 %v87_v5, %v86_v3 }
  0x2b   :  { %p170_p5 = por %p169_p4, %p168_p3 }
  0x2c   :  { %113 = vpow2.f32 %v40_v6  ;;  %v89_v8 = vrot.slane %v88_v7, 2 }
  0x2d   :  { %p171_p6 = pnand %p170_p5, %p164_p2 }
  0x2e   :  { %v90_v9 = vadd.f32 %v89_v8, %v88_v7 }
  0x30   :  { %v91_v10 = vrot.slane %v90_v9, 1 }
  0x32   :  { %v92_v11 = vadd.f32 %v91_v10, %v90_v9 }
  0x34   :  { %93 = vst [vmem:[#allocation7 + $0x3] sm:$0x1] %v92_v11 }
  0x36   :  { %v114_v12 = vpop.eup %113 }
  0x37   :  { %v45_v13 = vadd.f32 1.0, %v114_v12  ;;  %v48_v14 = vmul.f32 -0.5, %v114_v12  ;;  %v51_v18 = vand.u32 2147483647, %v114_v12 }
  0x39   :  { %115 = vlog2.f32 %v45_v13  ;;  %v49_v15 = vadd.f32 1.0, %v48_v14  ;;  %vm52_vm1 = vcmp.lt.f32.partialorder %v51_v18, 0.0004427343 }
  0x3a   :  { %117 = vrcp.f32 %v45_v13 }
  0x3b   :  { %v50_v19 = vmul.f32 %v114_v12, %v49_v15 }
  0x43   :  { %v116_v20 = vpop.eup %115 }
  0x44   :  { %v118_v22 = vpop.eup %117  ;;  %v47_v23 = vmul.f32 0.6931472, %v116_v20 }
  0x45   :  { %v58_v24 = vmul.f32 %v118_v22, %v114_v12 }
  0x46   :  { %v53_v25 = vsel %vm52_vm1, %v50_v19, %v47_v23 }
  0x47   :  { %v54_v26 = vadd.f32 %v53_v25, %v44_v21  ;;  %v59_v27 = vsel %vm57_vm2, %v118_v22, %v58_v24 }
  0x48   :  { %v69_v28 = vmul.f32 %v59_v27, %v37_v1  ;;  %v78_v29 = vsel %vm60_vm0, %v59_v27, 0.0 }
  0x49   :  { %v61_v30 = vsel %vm60_vm0, %v54_v26, 0.0  ;;  %v79_v31 = vrot.slane %v78_v29, 4 }
  0x4a   :  { %v62_v32 = vrot.slane %v61_v30, 4  ;;  %v70_v33 = vsel %vm60_vm0, %v69_v28, 0.0 }
  0x4b   :  { %v71_v34 = vrot.slane %v70_v33, 4  ;;  %v80_v35 = vadd.f32 %v79_v31, %v78_v29 }
  0x4c   :  { %v63_v36 = vadd.f32 %v62_v32, %v61_v30 }
  0x4d   :  { %v72_v37 = vadd.f32 %v71_v34, %v70_v33  ;;  %v81_v38 = vrot.slane %v80_v35, 2 }
  0x4e   :  { %v64_v39 = vrot.slane %v63_v36, 2 }
  0x4f   :  { %v73_v40 = vrot.slane %v72_v37, 2  ;;  %v82_v41 = vadd.f32 %v81_v38, %v80_v35 }
  0x50   :  { %v65_v42 = vadd.f32 %v64_v39, %v63_v36 }
  0x51   :  { %v74_v43 = vadd.f32 %v73_v40, %v72_v37  ;;  %v83_v44 = vrot.slane %v82_v41, 1 }
  0x52   :  { %v66_v45 = vrot.slane %v65_v42, 1 }
  0x53   :  { %v75_v46 = vrot.slane %v74_v43, 1  ;;  %v84_v47 = vadd.f32 %v83_v44, %v82_v41 }
  0x54   :  { %v67_v48 = vadd.f32 %v66_v45, %v65_v42 }
  0x55   :  { %v76_v49 = vadd.f32 %v75_v46, %v74_v43  ;;  %85 = vst [vmem:[#allocation7 + $0x2] sm:$0x1] %v84_v47 }
  0x56   :  { %68 = vst [vmem:[#allocation7] sm:$0x1] %v67_v48 }
  0x57   :  { %77 = vst [vmem:[#allocation7 + $0x1] sm:$0x1] %v76_v49 }
  0x58   :  { %174 = shalt.err (!%p171_p6)
}
  0x59   :  { %s175_s8 = scalar_lea.hbm %s251_s2, 64 }
  0x5a   :  { %p176_p7 = scmp.ne.s32.totalorder %s251_s2, %s175_s8  ;;  %p179_p8 = scmp.lt.u32.totalorder %s175_s8, %s251_s2 }
  0x5c   :  { %p181_p9 = pnand %p179_p8, %p176_p7 }
  0x5e   :  { %184 = shalt.err (!%p181_p9)
}
  0x5f   :  { %103 = dma.vmem_to_hbm [thread:$0]  %s101_s4, 64, %s251_s2, [#allocation4]  }
  0x60   :  { %189 = dma.done.wait [#allocation4], 64  }
  0x61   :  { %190 = vsyncadd [#allocation4], 4294967232 }
  0x62   :  { %107 = vsyncpa [#allocation3], 1 }
  0x63   :  { %108 = vsyncpa [#allocation6], 1 }
  0x64   :  { %109 = vsyncpa [#allocation4], 1 }

</bundles_post_ra>
